<compile_context>
chip_gen: v7x
topology: tpu7x:2x2x1
jax: 0.10.0
libtpu: 0.0.40
codegen_flags: <defaults>
</compile_context>

<pallas_src>
import jax
import jax.numpy as jnp
from jax import lax
from jax.experimental import pallas as pl
from jax.experimental.pallas import tpu as pltpu


def mlp_kernel(x_ref, w1_ref, b1_ref, w2_ref, b2_ref, o_ref):
    # fc1: contract x (tb, 64) against w1 in its native (16, 64) layout -> (tb, 16).
    # f32 accumulation on the MXU regardless of input dtype.
    h = lax.dot_general(
        x_ref[...],
        w1_ref[...],
        dimension_numbers=(((1,), (1,)), ((), ())),
        preferred_element_type=jnp.float32,
    )
    h = jnp.maximum(h + b1_ref[...], 0.0)  # bias + ReLU on the VPU, f32
    # fc2: contract w2 (1, 16) against h (tb, 16) over the 16-dim -> (1, tb).
    # This gives a lane-dense output row directly (no (tb, 1) lane-sparse tile,
    # no masked vst.msk stores, no 128x-padded output VMEM buffer).
    o = lax.dot_general(
        w2_ref[...],
        h,
        dimension_numbers=(((1,), (1,)), ((), ())),
        preferred_element_type=jnp.float32,
    ) + b2_ref[0]
    o_ref[...] = o.astype(o_ref.dtype)


def _round_up(v, m):
    return -(-v // m) * m


def net_forward(x, w1, b1, w2, b2, *, block_b=8192):
    """Pallas equivalent of Net.forward.

    x:  (B, 64)  float32 or bfloat16 (caller-supplied dtype is honored)
    w1: (16, 64) float32  (PyTorch nn.Linear weight layout: (out, in))
    b1: (16,)    float32
    w2: (1, 16)  float32
    b2: (1,)     float32
    returns (B, 1) float32
    """
    B, D = x.shape
    assert D == 64 and w1.shape == (16, 64) and b1.shape == (16,)
    assert w2.shape == (1, 16) and b2.shape == (1,)

    # Tile selection.
    if B >= 256:
        # >= 2 grid steps so v7x's two TensorCores both get work under
        # dimension_semantics=("parallel",).  Tiles are a multiple of 128 rows
        # so the (1, tb) output block stays lane-dense (unmasked stores) and
        # the (tb, 64) x block satisfies sublane divisibility on the partial
        # edge block.  At the default block_b=8192 the f32 x tile is 2 MiB
        # (4 MiB double-buffered) -- well inside the 16 MiB scoped-VMEM default
        # on v5e and the 32 MiB defaults on v6e/v7x, so no vmem_limit_bytes
        # override is needed.
        tb = min(_round_up(block_b, 128), _round_up(pl.cdiv(B, 2), 128))
    else:
        # Single tile whose block extents equal the full array dims: no (8,128)
        # alignment constraint, no padding, no partial block.
        tb = B
    n_tiles = pl.cdiv(B, tb)

    # Kernel honors the caller's x dtype: casting x here would add a full
    # extra read+write pass over x in HBM for a mem-bound kernel.  Only the
    # tiny (4 KiB) weight is cast to match; accumulation stays f32.
    in_dtype = x.dtype
    w1_in = w1.astype(in_dtype)
    b1_r = b1.reshape(1, 16).astype(jnp.float32)
    w2_r = w2.reshape(1, 16).astype(jnp.float32)
    b2_r = b2.reshape(1).astype(jnp.float32)

    itemsize = jnp.dtype(in_dtype).itemsize
    cost = pl.CostEstimate(
        flops=2 * B * (64 * 16 + 16),
        transcendentals=0,
        bytes_accessed=(
            B * 64 * itemsize          # x
            + n_tiles * tb * 4         # out
            + 16 * 64 * itemsize       # w1
            + 16 * 4 + 16 * 4 + 4      # b1, w2, b2
        ),
    )

    out = pl.pallas_call(
        mlp_kernel,
        out_shape=jax.ShapeDtypeStruct((1, n_tiles * tb), jnp.float32),
        grid=(n_tiles,),
        in_specs=[
            pl.BlockSpec((tb, 64), lambda i: (i, 0)),            # x: tiled over batch
            pl.BlockSpec((16, 64), lambda i: (0, 0)),            # w1: resident in VMEM
            pl.BlockSpec((1, 16), lambda i: (0, 0)),             # b1: resident
            pl.BlockSpec((1, 16), lambda i: (0, 0)),             # w2 row: resident
            pl.BlockSpec(memory_space=pltpu.MemorySpace.SMEM),   # b2: scalar in SMEM
        ],
        # Lane-dense (1, tb) output row per grid step; partial-tail columns
        # (from the ragged last x block) are sliced off below.
        out_specs=pl.BlockSpec((1, tb), lambda i: (0, i)),
        compiler_params=pltpu.CompilerParams(
            dimension_semantics=("parallel",),
        ),
        cost_estimate=cost,
    )(x, w1_in, b1_r, w2_r, b2_r)

    # (1, n_tiles*tb) row-major -> first B entries are the batch results.
    return out.reshape(-1)[:B].reshape(B, 1)


def init_params(key):
    """Deterministic init mimicking nn.Linear default (uniform +/- 1/sqrt(fan_in))."""
    k1, k2, k3, k4 = jax.random.split(key, 4)
    bound1 = 1.0 / jnp.sqrt(64.0)
    bound2 = 1.0 / jnp.sqrt(16.0)
    w1 = jax.random.uniform(k1, (16, 64), jnp.float32, -bound1, bound1)
    b1 = jax.random.uniform(k2, (16,), jnp.float32, -bound1, bound1)
    w2 = jax.random.uniform(k3, (1, 16), jnp.float32, -bound2, bound2)
    b2 = jax.random.uniform(k4, (1,), jnp.float32, -bound2, bound2)
    return w1, b1, w2, b2


def _ref_forward(x, w1, b1, w2, b2):
    return jnp.maximum(x @ w1.T + b1, 0.0) @ w2.T + b2


if __name__ == "__main__":
    key = jax.random.PRNGKey(0)
    k_x, k_x2, k_x3, k_p = jax.random.split(key, 4)
    w1, b1, w2, b2 = init_params(k_p)

    # Small single-tile case (block extents == full array dims).
    B = 8
    x = jax.random.normal(k_x, (B, 64), jnp.float32)
    out = jax.block_until_ready(net_forward(x, w1, b1, w2, b2))
    ref = _ref_forward(x, w1, b1, w2, b2)
    assert out.shape == (B, 1)
    assert jnp.allclose(out, ref, atol=1e-5, rtol=1e-5)

    # Multi-step grid with a partial edge block (no wrapper-side padding pass).
    B2 = 300
    x2 = jax.random.normal(k_x2, (B2, 64), jnp.float32)
    out2 = jax.block_until_ready(net_forward(x2, w1, b1, w2, b2, block_b=256))
    ref2 = _ref_forward(x2, w1, b1, w2, b2)
    assert out2.shape == (B2, 1)
    assert jnp.allclose(out2, ref2, atol=1e-5, rtol=1e-5)

    # Default tiling on a modest batch (2-step grid, ragged tail).
    B3 = 1000
    x3 = jax.random.normal(k_x3, (B3, 64), jnp.float32)
    out3 = jax.block_until_ready(net_forward(x3, w1, b1, w2, b2))
    ref3 = _ref_forward(x3, w1, b1, w2, b2)
    assert out3.shape == (B3, 1)
    assert jnp.allclose(out3, ref3, atol=1e-5, rtol=1e-5)

    # Caller-supplied bf16 x (no wrapper-side cast pass over x); f32 accumulation.
    out4 = jax.block_until_ready(net_forward(x3.astype(jnp.bfloat16), w1, b1, w2, b2))
    assert out4.shape == (B3, 1)
    assert jnp.allclose(out4, ref3, atol=5e-2, rtol=5e-2)

    print("KERNEL_OK")
</pallas_src>

<mosaic_0001>
module attributes {stable_mosaic.version = 11 : i64} {
  func.func @mlp_kernel(%arg0: i32, %arg1: memref<8x64xf32, #tpu.memory_space<vmem>>, %arg2: memref<16x64xf32, #tpu.memory_space<vmem>>, %arg3: memref<1x16xf32, #tpu.memory_space<vmem>>, %arg4: memref<1x16xf32, #tpu.memory_space<vmem>>, %arg5: memref<1xf32, #tpu.memory_space<smem>>, %arg6: memref<1x8xf32, #tpu.memory_space<vmem>>) attributes {dimension_semantics = [#tpu.dimension_semantics<parallel>], iteration_bounds = array<i64: 1>, scalar_prefetch = 0 : i64, scratch_operands = 0 : i64, tpu.core_type = #tpu.core_type<tc>, window_params = [{transform_indices = @transform_0, window_bounds = array<i64: 8, 64>}, {pipeline_mode = #tpu.pipeline_mode<synchronous>, transform_indices = @transform_1, window_bounds = array<i64: 16, 64>}, {pipeline_mode = #tpu.pipeline_mode<synchronous>, transform_indices = @transform_2, window_bounds = array<i64: 1, 16>}, {pipeline_mode = #tpu.pipeline_mode<synchronous>, transform_indices = @transform_3, window_bounds = array<i64: 1, 16>}, {transform_indices = @transform_4, window_bounds = array<i64: 1>}, {transform_indices = @transform_5, window_bounds = array<i64: 1, 8>}]} {
    %c0 = arith.constant 0 : index
    %c0_0 = arith.constant 0 : index
    %0 = vector.load %arg1[%c0, %c0_0] : memref<8x64xf32, #tpu.memory_space<vmem>>, vector<8x64xf32>
    %c0_1 = arith.constant 0 : index
    %c0_2 = arith.constant 0 : index
    %1 = vector.load %arg2[%c0_1, %c0_2] : memref<16x64xf32, #tpu.memory_space<vmem>>, vector<16x64xf32>
    %cst = arith.constant dense<0.000000e+00> : vector<8x16xf32>
    %2 = tpu.matmul %0, %1, %cst {dimension_numbers = #tpu.dot_dimension_numbers<[1], [1], [0], [0], [0, 0, 1, 0], [], []>} : vector<8x64xf32>, vector<16x64xf32>, vector<8x16xf32> -> vector<8x16xf32>
    %c0_3 = arith.constant 0 : index
    %c0_4 = arith.constant 0 : index
    %3 = vector.load %arg3[%c0_3, %c0_4] : memref<1x16xf32, #tpu.memory_space<vmem>>, vector<1x16xf32>
    %4 = vector.broadcast %3 : vector<1x16xf32> to vector<8x16xf32>
    %5 = arith.addf %2, %4 : vector<8x16xf32>
    %cst_5 = arith.constant 0.000000e+00 : f32
    %6 = vector.broadcast %cst_5 : f32 to vector<8x16xf32>
    %7 = arith.maximumf %5, %6 : vector<8x16xf32>
    %c0_6 = arith.constant 0 : index
    %c0_7 = arith.constant 0 : index
    %8 = vector.load %arg4[%c0_6, %c0_7] : memref<1x16xf32, #tpu.memory_space<vmem>>, vector<1x16xf32>
    %cst_8 = arith.constant dense<0.000000e+00> : vector<1x8xf32>
    %9 = tpu.matmul %8, %7, %cst_8 {dimension_numbers = #tpu.dot_dimension_numbers<[1], [1], [0], [0], [0, 0, 1, 0], [], []>} : vector<1x16xf32>, vector<8x16xf32>, vector<1x8xf32> -> vector<1x8xf32>
    %c0_9 = arith.constant 0 : index
    %10 = memref.load %arg5[%c0_9] : memref<1xf32, #tpu.memory_space<smem>>
    %11 = vector.broadcast %10 : f32 to vector<1x8xf32>
    %12 = arith.addf %9, %11 : vector<1x8xf32>
    %c0_10 = arith.constant 0 : index
    %c0_11 = arith.constant 0 : index
    %13 = vector.load %arg6[%c0_10, %c0_11] : memref<1x8xf32, #tpu.memory_space<vmem>>, vector<1x8xf32>
    tpu.vector_store %arg6[%c0_10, %c0_11], %12 {strides = array<i32>} : memref<1x8xf32, #tpu.memory_space<vmem>>, vector<1x8xf32>,
    return
  }
  func.func @transform_0(%arg0: i32) -> (i32, i32) {
    %c0_i32 = arith.constant 0 : i32
    %c0_i32_0 = arith.constant 0 : i32
    return %arg0, %c0_i32 : i32, i32
  }
  func.func @transform_1(%arg0: i32) -> (i32, i32) {
    %c0_i32 = arith.constant 0 : i32
    %c0_i32_0 = arith.constant 0 : i32
    %c0_i32_1 = arith.constant 0 : i32
    return %c0_i32, %c0_i32_0 : i32, i32
  }
  func.func @transform_2(%arg0: i32) -> (i32, i32) {
    %c0_i32 = arith.constant 0 : i32
    %c0_i32_0 = arith.constant 0 : i32
    %c0_i32_1 = arith.constant 0 : i32
    return %c0_i32, %c0_i32_0 : i32, i32
  }
  func.func @transform_3(%arg0: i32) -> (i32, i32) {
    %c0_i32 = arith.constant 0 : i32
    %c0_i32_0 = arith.constant 0 : i32
    %c0_i32_1 = arith.constant 0 : i32
    return %c0_i32, %c0_i32_0 : i32, i32
  }
  func.func @transform_4(%arg0: i32) -> i32 {
    %c0_i32 = arith.constant 0 : i32
    %c0_i32_0 = arith.constant 0 : i32
    return %c0_i32 : i32
  }
  func.func @transform_5(%arg0: i32) -> (i32, i32) {
    %c0_i32 = arith.constant 0 : i32
    %c0_i32_0 = arith.constant 0 : i32
    return %c0_i32, %arg0 : i32, i32
  }
}

</mosaic_0001>

<bundles_post_ra>
// kernel: tpu_custom_call.1
= control target key start
LH: loop header
LB: loop body
LE: loop exit
PB: predicated region body
PF: predicated region fallthrough
CT: control target
= control target key end

     0   :  { %11 = vsyncpa [#allocation4], 0  ;;  %s434_s0 = inlined_call_operand.hbm [shape: f32[8,64], index: 0, kind: input, shape index: {}]   ;;  %s435_s1 = inlined_call_operand.hbm [shape: f32[16,64], index: 1, kind: input, shape index: {}]   ;;  %s436_s2 = inlined_call_operand.vmem [shape: f32[1,16], index: 2, kind: input, shape index: {}]   ;;  %s437_s3 = inlined_call_operand.vmem [shape: f32[1,16], index: 3, kind: input, shape index: {}]   ;;  %s438_s4 = inlined_call_operand.<no memory space> [shape: f32[1], index: 4, kind: input, shape index: {}]   ;;  %s439_s5 = inlined_call_operand.hbm [shape: f32[1,8], index: 5, kind: output, shape index: {}]  }
   0x1   :  { %12 = vsyncpa [#allocation7], 0 }
   0x2   :  { %13 = vsyncpa [#allocation5], 0  ;;  %s344_s18 = smov [#allocation3]   ;;  %s345_s20 = smov [#allocation6]  }
   0x3   :  { %s20_s19 = sshll.u32 %s344_s18, 4  ;;  %s29_s21 = sshll.u32 %s345_s20, 4  ;;  %s21_s19 = int_to_ptr.vmem [resolvable:$true] %s20_s19  ;;  %s382_s21 = int_to_ptr.vmem [resolvable:$true] %s29_s21 }
   0x4   :  { %s272_s24 = scalar_lea.hbm %s434_s0, 128 }
   0x5   :  { %p273_p0 = scmp.ne.s32.totalorder %s434_s0, %s272_s24  ;;  %p276_p1 = scmp.lt.u32.totalorder %s272_s24, %s434_s0 }
   0x7   :  { %p278_p2 = pnand %p276_p1, %p273_p0 }
   0x9   :  { %281 = shalt.err (!%p278_p2)
}
   0xa   :  { %s282_s29 = scalar_lea.vmem %s21_s19, 128  ;;  %p287_p4 = scmp.lt.s32.totalorder %s21_s19, %s21_s19 }
   0xb   :  { %p283_p3 = scmp.ne.s32.totalorder %s21_s19, %s282_s29  ;;  %p288_p5 = scmp.lt.s32.totalorder %s282_s29, %s282_s29 }
   0xd   :  { %p289_p6 = por %p288_p5, %p287_p4 }
   0xf   :  { %p290_p7 = pnand %p289_p6, %p283_p3 }
  0x11   :  { %293 = shalt.err (!%p290_p7)
}
  0x12   :  { %23 = dma.hbm_to_vmem [thread:$0]  %s434_s0, 128, %s21_s19, [#allocation4]  }
  0x13   :  { %s294_s9 = scalar_lea.hbm %s435_s1, 256 }
  0x14   :  { %p295_p8 = scmp.ne.s32.totalorder %s435_s1, %s294_s9  ;;  %p298_p9 = scmp.lt.u32.totalorder %s294_s9, %s435_s1 }
  0x16   :  { %p300_p10 = pnand %p298_p9, %p295_p8 }
  0x18   :  { %303 = shalt.err (!%p300_p10)
}
  0x19   :  { %s304_s14 = scalar_lea.vmem %s382_s21, 256  ;;  %p309_p12 = scmp.lt.s32.totalorder %s382_s21, %s382_s21 }
  0x1a   :  { %p305_p11 = scmp.ne.s32.totalorder %s382_s21, %s304_s14  ;;  %p310_p13 = scmp.lt.s32.totalorder %s304_s14, %s304_s14 }
  0x1c   :  { %p311_p0 = por %p310_p13, %p309_p12 }
  0x1e   :  { %p312_p1 = pnand %p311_p0, %p305_p11 }
  0x20   :  { %315 = shalt.err (!%p312_p1)
}
  0x21   :  { %s346_s0 = smov 128   ;;  %s347_s15 = smov 8  }
  0x22   :  { %35 = dma.hbm_to_vmem [thread:$0]  %s435_s1, 256, %s382_s21, [#allocation7], %s346_s0, %s346_s0, %s347_s15  }
  0x23   :  { %338 = dma.done.wait [#allocation4], 128  }
  0x24   :  { %339 = vsyncadd [#allocation4], 4294967168 }
  0x25   :  { %340 = dma.done.wait [#allocation7], 256  }
  0x26   :  { %341 = vsyncadd [#allocation7], 4294967040  ;;  %v348_v0 = vmov 0.0|0.0   ;;  %vm349_vm0 = vmmov 0   ;;  %v350_v1 = vmov 0.0   ;;  %vm58_vm1 = vcmask 523264  }
  0x27   :  { %260 = vmatprep.subr.bf16.mxu0 %v348_v0  ;;  %252 = vmatprep.mubr.msk.f32.mxu0 %vm349_vm0, %v350_v1  ;;  %v49_v2 = vld [vmem:[#allocation6] sm:$0xff]  ;;  %v50_v3 = vld [vmem:[#allocation6 + $0x8] sm:$0xff]  ;;  %vm262_vm2 = vmpackc.low %vm58_vm1, %vm58_vm1  ;;  %vm142_vm3 = vcmask 130048   ;;  %v141_v12 = vstv %s438_s4  ;;  %s351_s23 = smov [#allocation8]   ;;  %vm219_vm4 = vcmask 57344  }
  0x28   :  { %255 = vmatprep.subr.mxu1 %v350_v1  ;;  %257 = vmatprep.mubr.msk.f32.mxu1 %vm349_vm0, %v350_v1  ;;  %v261_v4 = vpack.c.bf16 %v50_v3, %v49_v2  ;;  %v48_v5 = vld [vmem:[#allocation3] sm:$0xff]  ;;  %s227_s24 = sshll.u32 %s351_s23, 4  ;;  %s228_s24 = int_to_ptr.vmem [resolvable:$true] %s227_s24 }
  0x29   :  { %v237_v6 = vld [vmem:[%s436_s2] ss:$0 sm:$0xff]  ;;  %s316_s2 = scalar_lea.vmem %s228_s24, 16  ;;  %s320_s25 = scalar_lea.vmem %s228_s24, 32 }
  0x2a   :  { %263 = vmatpush3.bf16.xpose.msk.msra.mxu0 %vm262_vm2, %v261_v4  ;;  %v139_v11 = vld [vmem:[%s437_s3] sm:$0x1]  ;;  %p317_p2 = scmp.ne.s32.totalorder %s228_s24, %s316_s2  ;;  %p321_p3 = scmp.lt.s32.totalorder %s228_s24, %s228_s24 }
  0x2b   :  { %p322_p4 = scmp.lt.s32.totalorder %s320_s25, %s316_s2 }
  0x2d   :  { %p323_p5 = por %p322_p4, %p321_p3 }
  0x2f   :  { %p324_p6 = pnand %p323_p5, %p317_p2 }
  0x31   :  { %253 = vmatmul.mubr.msk.f32.vlgmr.msra.gmra.mrb[0].mxu0 %vm58_vm1, %v48_v5 }
 0x104   :  { %v134_v7 = vpop.f32.mrb[0].mxu0 }
 0x105   :  { %v135_v8 = vadd.f32 %v237_v6, %v134_v7  ;;  %v254_v9 = vpop.f32.mrb[1].mxu0 }
 0x107   :  { %v138_v10 = vmax.f32 %v135_v8, 0.0 }
 0x109   :  { %256 = vmatpush3.xpose.msk.msra.mxu1 %vm142_vm3, %v138_v10 }
 0x10c   :  { %258 = vmatmul.mubr.msk.f32.vlgmr.msra.gmra.mrb[0].mxu1 %vm142_vm3, %v139_v11 }
 0x1df   :  { %v215_v13 = vpop.f32.mrb[0].mxu1 }
 0x1e0   :  { %v216_v14 = vadd.f32 %v215_v13, %v141_v12  ;;  %v259_v15 = vpop.f32.mrb[1].mxu1 }
 0x1e2   :  { %220 = vst.msk [vmem:[#allocation8] sm:$0x1] %vm219_vm4, %v216_v14 }
 0x1e3   :  { %327 = shalt.err (!%p324_p6)
}
 0x1e4   :  { %s328_s4 = scalar_lea.hbm %s439_s5, 16 }
 0x1e5   :  { %p329_p7 = scmp.ne.s32.totalorder %s439_s5, %s328_s4  ;;  %p332_p8 = scmp.lt.u32.totalorder %s328_s4, %s439_s5 }
 0x1e7   :  { %p334_p9 = pnand %p332_p8, %p329_p7 }
 0x1e9   :  { %337 = shalt.err (!%p334_p9)
}
 0x1ea   :  { %230 = dma.vmem_to_hbm [thread:$0]  %s228_s24, 16, %s439_s5, [#allocation5]  }
 0x1eb   :  { %342 = dma.done.wait [#allocation5], 16  }
 0x1ec   :  { %343 = vsyncadd [#allocation5], 4294967280 }
 0x1ed   :  { %234 = vsyncpa [#allocation4], 1 }
 0x1ee   :  { %235 = vsyncpa [#allocation7], 1 }
 0x1ef   :  { %236 = vsyncpa [#allocation5], 1 }

</bundles_post_ra>
